<compile_context>
chip_gen: v7x
topology: tpu7x:2x2x1
jax: 0.10.0
libtpu: 0.0.40
codegen_flags: <defaults>
</compile_context>

<pallas_src>
import jax
import jax.numpy as jnp
from jax.experimental import pallas as pl
from jax.experimental.pallas import tpu as pltpu


def _projection_kernel(x_ref, w1_ref, b1_ref, w2_ref, b2_ref, o_ref, acc_ref):
    k = pl.program_id(1)

    @pl.when(k == 0)
    def _():
        acc_ref[...] = jnp.zeros_like(acc_ref)

    # Linear 1 partial product: cast the f32 x tile to bf16 in-register for the
    # MXU, accumulate in f32 scratch across the K grid axis.
    acc_ref[...] += jnp.dot(x_ref[...].astype(jnp.bfloat16), w1_ref[...],
                            preferred_element_type=jnp.float32)

    @pl.when(k == pl.num_programs(1) - 1)
    def _():
        # Bias + ReLU in f32 on the VPU.
        h = jnp.maximum(acc_ref[...] + b1_ref[...], 0.0)   # b1 is (1, H) -> broadcasts
        # Linear 2: bf16 MXU matmul, f32 accumulation.
        y = jnp.dot(h.astype(jnp.bfloat16), w2_ref[...],
                    preferred_element_type=jnp.float32)
        y = y + b2_ref[...]                                 # b2 is (1, O) -> broadcasts
        # F.normalize(y, dim=1): y / max(||y||, 1e-12) as a clamped rsqrt mul.
        sq = jnp.sum(y * y, axis=1, keepdims=True)
        inv = jax.lax.rsqrt(jnp.maximum(sq, 1e-24))         # 1e-24 = eps^2
        o_ref[...] = (y * inv).astype(o_ref.dtype)


def _round_up(n, m):
    return ((n + m - 1) // m) * m


def _pick_k_tile(input_dim, hidden_dim, max_w1_bytes=16 << 20):
    """Choose the K (input_dim) tile: full K if W1 fits comfortably, otherwise
    the largest multiple of 128 that divides input_dim under the byte budget."""
    if input_dim * hidden_dim * 2 <= max_w1_bytes:
        return input_dim
    max_tk = max(128, (max_w1_bytes // (hidden_dim * 2)) // 128 * 128)
    start = (min(max_tk, input_dim) // 128) * 128
    for tk in range(start, 0, -128):
        if input_dim % tk == 0:
            return tk
    # TODO(synk): input_dim has no multiple-of-128 divisor; fall back to full K
    # (partial K blocks would feed OOB garbage into the accumulation).
    return input_dim


def projection_forward(x_nchw, w1, b1, w2, b2, *, block_rows=256):
    """Forward pass of the Projection head.

    x_nchw : (B, C, H, W) float32 (flattened exactly like input.view(B, -1))
    w1     : (input_dim, hidden_dim)   -- ideally already bf16 (stored params)
    b1     : (hidden_dim,)             -- f32
    w2     : (hidden_dim, output_dim)  -- ideally already bf16
    b2     : (output_dim,)             -- f32
    returns: (B, output_dim) float32, rows L2-normalized

    block_rows: batch tile. 256 suits v6e/v7x (256x256 MXU); use 128 on v5e.
    """
    B = x_nchw.shape[0]
    x2d = x_nchw.reshape(B, -1)                    # Flatten (glue, plain JAX); stays f32
    input_dim = x2d.shape[1]
    hidden_dim = w1.shape[1]
    output_dim = w2.shape[1]
    assert w1.shape == (input_dim, hidden_dim)
    assert w2.shape == (hidden_dim, output_dim)

    # Weights: cast only if the caller did not already store them in bf16.
    w1_bf = w1 if w1.dtype == jnp.bfloat16 else w1.astype(jnp.bfloat16)
    w2_bf = w2 if w2.dtype == jnp.bfloat16 else w2.astype(jnp.bfloat16)
    # Biases stay f32, presented as (1, N) lane-major tiles.
    b1_2d = b1.reshape(1, hidden_dim).astype(jnp.float32)
    b2_2d = b2.reshape(1, output_dim).astype(jnp.float32)

    # Batch tiling: tm rows per grid step (multiple of 8 for f32 sublane tiling).
    tm = min(block_rows, _round_up(B, 8))
    nb = pl.cdiv(B, tm)                            # partial last block handled by Pallas
    # K tiling of the first matmul.
    tk = _pick_k_tile(input_dim, hidden_dim)
    nk = input_dim // tk
    grid = (nb, nk)

    # BlockSpecs. Constant-index operands are single-buffered to save VMEM.
    x_spec = pl.BlockSpec((tm, tk), lambda i, k: (i, k))
    if nk == 1:
        w1_spec = pl.BlockSpec((tk, hidden_dim), lambda i, k: (0, 0),
                               pipeline_mode=pl.Buffered(1))
        w1_bufs = 1
    else:
        w1_spec = pl.BlockSpec((tk, hidden_dim), lambda i, k: (k, 0))
        w1_bufs = 2
    b1_spec = pl.BlockSpec((1, hidden_dim), lambda i, k: (0, 0),
                           pipeline_mode=pl.Buffered(1))
    w2_spec = pl.BlockSpec((hidden_dim, output_dim), lambda i, k: (0, 0),
                           pipeline_mode=pl.Buffered(1))
    b2_spec = pl.BlockSpec((1, output_dim), lambda i, k: (0, 0),
                           pipeline_mode=pl.Buffered(1))
    out_spec = pl.BlockSpec((tm, output_dim), lambda i, k: (i, 0))

    # VMEM budget (bytes): double-buffered x/out tiles, weights, biases,
    # f32 accumulator scratch and f32 temporaries.
    vmem_est = (
        2 * tm * tk * 4                           # x tiles (f32, double-buffered)
        + 2 * tm * output_dim * 4                 # out tiles
        + w1_bufs * tk * hidden_dim * 2           # W1 tile(s), bf16
        + hidden_dim * output_dim * 2             # W2 (single-buffered), bf16
        + 4 * (hidden_dim + output_dim)           # biases
        + tm * hidden_dim * 4                     # accumulator scratch
        + 4 * tm * (hidden_dim + output_dim)      # f32 temporaries (h, y)
    )
    compiler_kwargs = dict(dimension_semantics=("parallel", "arbitrary"))
    if vmem_est > (16 << 20):
        # Cap below 64 MiB so v7x (64 MiB physical per TC) keeps compiler headroom.
        compiler_kwargs["vmem_limit_bytes"] = min(vmem_est + (8 << 20), 48 << 20)

    cost = pl.CostEstimate(
        flops=2 * B * (input_dim * hidden_dim + hidden_dim * output_dim),
        transcendentals=B,
        bytes_accessed=(B * input_dim * 4 + input_dim * hidden_dim * 2
                        + hidden_dim * output_dim * 2
                        + 4 * (hidden_dim + output_dim) + B * output_dim * 4),
    )

    out = pl.pallas_call(
        _projection_kernel,
        out_shape=jax.ShapeDtypeStruct((B, output_dim), jnp.float32),
        grid_spec=pltpu.PrefetchScalarGridSpec(
            num_scalar_prefetch=0,
            grid=grid,
            in_specs=[x_spec, w1_spec, b1_spec, w2_spec, b2_spec],
            out_specs=out_spec,
            scratch_shapes=[pltpu.VMEM((tm, hidden_dim), jnp.float32)],
        ),
        compiler_params=pltpu.CompilerParams(**compiler_kwargs),
        cost_estimate=cost,
    )(x2d, w1_bf, b1_2d, w2_bf, b2_2d)

    return out


def init_params(key, input_dim, hidden_dim, output_dim):
    """Deterministic init mimicking nn.Linear's default U(-1/sqrt(fan_in), ...).

    Weights are cast to bf16 ONCE here (stored params), biases stay f32.
    """
    k1, k2, k3, k4 = jax.random.split(key, 4)
    bound1 = 1.0 / jnp.sqrt(input_dim)
    bound2 = 1.0 / jnp.sqrt(hidden_dim)
    w1 = jax.random.uniform(k1, (input_dim, hidden_dim), jnp.float32, -bound1, bound1)
    b1 = jax.random.uniform(k2, (hidden_dim,), jnp.float32, -bound1, bound1)
    w2 = jax.random.uniform(k3, (hidden_dim, output_dim), jnp.float32, -bound2, bound2)
    b2 = jax.random.uniform(k4, (output_dim,), jnp.float32, -bound2, bound2)
    return w1.astype(jnp.bfloat16), b1, w2.astype(jnp.bfloat16), b2


if __name__ == "__main__":
    # Small shapes consistent with the module: input flattens to input_dim.
    B, C, H, W = 8, 4, 8, 8          # input_dim = 4*8*8 = 256
    input_dim = C * H * W            # 256
    hidden_dim = 256
    output_dim = 128

    key = jax.random.PRNGKey(0)
    kx, kp = jax.random.split(key)
    x = jax.random.normal(kx, (B, C, H, W), jnp.float32)
    w1, b1, w2, b2 = init_params(kp, input_dim, hidden_dim, output_dim)

    out = projection_forward(x, w1, b1, w2, b2)
    out = jax.block_until_ready(out)
    assert out.shape == (B, output_dim)

    # Reference 1: same math with matching bf16 matmul inputs (tight tolerance).
    x2d = x.reshape(B, -1)
    h_bf = jnp.dot(x2d.astype(jnp.bfloat16), w1, preferred_element_type=jnp.float32)
    h_bf = jnp.maximum(h_bf + b1, 0.0)
    y_bf = jnp.dot(h_bf.astype(jnp.bfloat16), w2, preferred_element_type=jnp.float32) + b2
    ref_bf = y_bf / jnp.maximum(jnp.linalg.norm(y_bf, axis=1, keepdims=True), 1e-12)
    assert jnp.allclose(out, ref_bf, atol=5e-3, rtol=5e-3)

    # Reference 2: full-f32 PyTorch-equivalent math (loose tolerance for bf16 MXU path).
    w1_f = w1.astype(jnp.float32)
    w2_f = w2.astype(jnp.float32)
    h_ref = jnp.maximum(x2d @ w1_f + b1, 0.0)
    y_ref = h_ref @ w2_f + b2
    ref = y_ref / jnp.maximum(jnp.linalg.norm(y_ref, axis=1, keepdims=True), 1e-12)
    assert jnp.allclose(out, ref, atol=5e-2, rtol=5e-2)

    print("KERNEL_OK")
</pallas_src>

<mosaic_0001>
module attributes {stable_mosaic.version = 11 : i64} {
  func.func @_projection_kernel(%arg0: i32, %arg1: i32, %arg2: memref<8x256xf32, #tpu.memory_space<vmem>>, %arg3: memref<256x256xbf16, #tpu.memory_space<vmem>>, %arg4: memref<1x256xf32, #tpu.memory_space<vmem>>, %arg5: memref<256x128xbf16, #tpu.memory_space<vmem>>, %arg6: memref<1x128xf32, #tpu.memory_space<vmem>>, %arg7: memref<8x128xf32, #tpu.memory_space<vmem>>, %arg8: memref<8x256xf32, #tpu.memory_space<vmem>>) attributes {dimension_semantics = [#tpu.dimension_semantics<parallel>, #tpu.dimension_semantics<arbitrary>], iteration_bounds = array<i64: 1, 1>, scalar_prefetch = 0 : i64, scratch_operands = 1 : i64, tpu.core_type = #tpu.core_type<tc>, window_params = [{transform_indices = @transform_0, window_bounds = array<i64: 8, 256>}, {pipeline_mode = #tpu.pipeline_mode<synchronous>, transform_indices = @transform_1, window_bounds = array<i64: 256, 256>}, {pipeline_mode = #tpu.pipeline_mode<synchronous>, transform_indices = @transform_2, window_bounds = array<i64: 1, 256>}, {pipeline_mode = #tpu.pipeline_mode<synchronous>, transform_indices = @transform_3, window_bounds = array<i64: 256, 128>}, {pipeline_mode = #tpu.pipeline_mode<synchronous>, transform_indices = @transform_4, window_bounds = array<i64: 1, 128>}, {transform_indices = @transform_5, window_bounds = array<i64: 8, 128>}]} {
    %c0_i32 = arith.constant 0 : i32
    %0 = arith.cmpi eq, %arg1, %c0_i32 : i32
    %1 = arith.extui %0 : i1 to i32
    %c0_i32_0 = arith.constant 0 : i32
    %2 = arith.cmpi ne, %1, %c0_i32_0 : i32
    scf.if %2 {
      %cst_10 = arith.constant 0.000000e+00 : f32
      %13 = vector.broadcast %cst_10 : f32 to vector<8x256xf32>
      %c0_11 = arith.constant 0 : index
      %c0_12 = arith.constant 0 : index
      %14 = vector.load %arg8[%c0_11, %c0_12] : memref<8x256xf32, #tpu.memory_space<vmem>>, vector<8x256xf32>
      tpu.vector_store %arg8[%c0_11, %c0_12], %13 {strides = array<i32>} : memref<8x256xf32, #tpu.memory_space<vmem>>, vector<8x256xf32>,
    } else {
    }
    %c0 = arith.constant 0 : index
    %c0_1 = arith.constant 0 : index
    %3 = vector.load %arg8[%c0, %c0_1] : memref<8x256xf32, #tpu.memory_space<vmem>>, vector<8x256xf32>
    %c0_2 = arith.constant 0 : index
    %c0_3 = arith.constant 0 : index
    %4 = vector.load %arg2[%c0_2, %c0_3] : memref<8x256xf32, #tpu.memory_space<vmem>>, vector<8x256xf32>
    %5 = arith.truncf %4 : vector<8x256xf32> to vector<8x256xbf16>
    %c0_4 = arith.constant 0 : index
    %c0_5 = arith.constant 0 : index
    %6 = vector.load %arg3[%c0_4, %c0_5] : memref<256x256xbf16, #tpu.memory_space<vmem>>, vector<256x256xbf16>
    %cst = arith.constant dense<0.000000e+00> : vector<8x256xf32>
    %7 = tpu.matmul %5, %6, %cst {dimension_numbers = #tpu.dot_dimension_numbers<[1], [0], [0], [1], [0, 0, 1, 1], [], []>} : vector<8x256xbf16>, vector<256x256xbf16>, vector<8x256xf32> -> vector<8x256xf32>
    %8 = arith.addf %3, %7 : vector<8x256xf32>
    %c0_6 = arith.constant 0 : index
    %c0_7 = arith.constant 0 : index
    %9 = vector.load %arg8[%c0_6, %c0_7] : memref<8x256xf32, #tpu.memory_space<vmem>>, vector<8x256xf32>
    tpu.vector_store %arg8[%c0_6, %c0_7], %8 {strides = array<i32>} : memref<8x256xf32, #tpu.memory_space<vmem>>, vector<8x256xf32>,
    %c0_i32_8 = arith.constant 0 : i32
    %10 = arith.cmpi eq, %arg1, %c0_i32_8 : i32
    %11 = arith.extui %10 : i1 to i32
    %c0_i32_9 = arith.constant 0 : i32
    %12 = arith.cmpi ne, %11, %c0_i32_9 : i32
    scf.if %12 {
      %c0_10 = arith.constant 0 : index
      %c0_11 = arith.constant 0 : index
      %13 = vector.load %arg8[%c0_10, %c0_11] : memref<8x256xf32, #tpu.memory_space<vmem>>, vector<8x256xf32>
      %c0_12 = arith.constant 0 : index
      %c0_13 = arith.constant 0 : index
      %14 = vector.load %arg4[%c0_12, %c0_13] : memref<1x256xf32, #tpu.memory_space<vmem>>, vector<1x256xf32>
      %15 = vector.broadcast %14 : vector<1x256xf32> to vector<8x256xf32>
      %16 = arith.addf %13, %15 : vector<8x256xf32>
      %cst_14 = arith.constant 0.000000e+00 : f32
      %17 = vector.broadcast %cst_14 : f32 to vector<8x256xf32>
      %18 = arith.maximumf %16, %17 : vector<8x256xf32>
      %19 = arith.truncf %18 : vector<8x256xf32> to vector<8x256xbf16>
      %c0_15 = arith.constant 0 : index
      %c0_16 = arith.constant 0 : index
      %20 = vector.load %arg5[%c0_15, %c0_16] : memref<256x128xbf16, #tpu.memory_space<vmem>>, vector<256x128xbf16>
      %cst_17 = arith.constant dense<0.000000e+00> : vector<8x128xf32>
      %21 = tpu.matmul %19, %20, %cst_17 {dimension_numbers = #tpu.dot_dimension_numbers<[1], [0], [0], [1], [0, 0, 1, 1], [], []>} : vector<8x256xbf16>, vector<256x128xbf16>, vector<8x128xf32> -> vector<8x128xf32>
      %c0_18 = arith.constant 0 : index
      %c0_19 = arith.constant 0 : index
      %22 = vector.load %arg6[%c0_18, %c0_19] : memref<1x128xf32, #tpu.memory_space<vmem>>, vector<1x128xf32>
      %23 = vector.broadcast %22 : vector<1x128xf32> to vector<8x128xf32>
      %24 = arith.addf %21, %23 : vector<8x128xf32>
      %25 = arith.mulf %24, %24 : vector<8x128xf32>
      %cst_20 = arith.constant dense<0.000000e+00> : vector<8xf32>
      %26 = vector.multi_reduction <add>, %25, %cst_20 [1] : vector<8x128xf32> to vector<8xf32>
      %27 = vector.shape_cast %26 : vector<8xf32> to vector<8x1xf32>
      %cst_21 = arith.constant 1.000000e-24 : f32
      %28 = vector.broadcast %cst_21 : f32 to vector<8x1xf32>
      %29 = arith.maximumf %27, %28 : vector<8x1xf32>
      %30 = math.rsqrt %29 : vector<8x1xf32>
      %31 = vector.broadcast %30 : vector<8x1xf32> to vector<8x128xf32>
      %32 = arith.mulf %24, %31 : vector<8x128xf32>
      %c0_22 = arith.constant 0 : index
      %c0_23 = arith.constant 0 : index
      %33 = vector.load %arg7[%c0_22, %c0_23] : memref<8x128xf32, #tpu.memory_space<vmem>>, vector<8x128xf32>
      tpu.vector_store %arg7[%c0_22, %c0_23], %32 {strides = array<i32>} : memref<8x128xf32, #tpu.memory_space<vmem>>, vector<8x128xf32>,
    } else {
    }
    return
  }
  func.func @transform_0(%arg0: i32, %arg1: i32) -> (i32, i32) {
    %c0_i32 = arith.constant 0 : i32
    return %arg0, %arg1 : i32, i32
  }
  func.func @transform_1(%arg0: i32, %arg1: i32) -> (i32, i32) {
    %c0_i32 = arith.constant 0 : i32
    %c0_i32_0 = arith.constant 0 : i32
    %c0_i32_1 = arith.constant 0 : i32
    return %c0_i32, %c0_i32_0 : i32, i32
  }
  func.func @transform_2(%arg0: i32, %arg1: i32) -> (i32, i32) {
    %c0_i32 = arith.constant 0 : i32
    %c0_i32_0 = arith.constant 0 : i32
    %c0_i32_1 = arith.constant 0 : i32
    return %c0_i32, %c0_i32_0 : i32, i32
  }
  func.func @transform_3(%arg0: i32, %arg1: i32) -> (i32, i32) {
    %c0_i32 = arith.constant 0 : i32
    %c0_i32_0 = arith.constant 0 : i32
    %c0_i32_1 = arith.constant 0 : i32
    return %c0_i32, %c0_i32_0 : i32, i32
  }
  func.func @transform_4(%arg0: i32, %arg1: i32) -> (i32, i32) {
    %c0_i32 = arith.constant 0 : i32
    %c0_i32_0 = arith.constant 0 : i32
    %c0_i32_1 = arith.constant 0 : i32
    return %c0_i32, %c0_i32_0 : i32, i32
  }
  func.func @transform_5(%arg0: i32, %arg1: i32) -> (i32, i32) {
    %c0_i32 = arith.constant 0 : i32
    %c0_i32_0 = arith.constant 0 : i32
    return %arg0, %c0_i32 : i32, i32
  }
}

</mosaic_0001>

<bundles_post_ra>
// kernel: tpu_custom_call.1
= control target key start
LH: loop header
LB: loop body
LE: loop exit
PB: predicated region body
PF: predicated region fallthrough
CT: control target
= control target key end

     0   :  { %10 = vsyncpa [#allocation4], 0  ;;  %s862_s0 = inlined_call_operand.hbm [shape: f32[8,256], index: 0, kind: input, shape index: {}]   ;;  %s863_s1 = inlined_call_operand.hbm [shape: bf16[256,256], index: 1, kind: input, shape index: {}]   ;;  %s864_s2 = inlined_call_operand.vmem [shape: f32[1,256], index: 2, kind: input, shape index: {}]   ;;  %s865_s3 = inlined_call_operand.hbm [shape: bf16[256,128], index: 3, kind: input, shape index: {}]   ;;  %s866_s4 = inlined_call_operand.vmem [shape: f32[1,128], index: 4, kind: input, shape index: {}]   ;;  %s867_s5 = inlined_call_operand.hbm [shape: f32[8,128], index: 5, kind: output, shape index: {}]  }
   0x1   :  { %11 = vsyncpa [#allocation7], 0 }
   0x2   :  { %12 = vsyncpa [#allocation5], 0  ;;  %s770_s18 = smov [#allocation6]   ;;  %s676_s22 = scalar_lea.hbm %s863_s1, 4096 }
   0x3   :  { %s28_s19 = sshll.u32 %s770_s18, 4  ;;  %p677_p0 = scmp.ne.s32.totalorder %s863_s1, %s676_s22  ;;  %s29_s19 = int_to_ptr.vmem [resolvable:$true] %s28_s19 }
   0x4   :  { %p680_p1 = scmp.lt.u32.totalorder %s676_s22, %s863_s1 }
   0x6   :  { %p682_p2 = pnand %p680_p1, %p677_p0 }
   0x8   :  { %685 = shalt.err (!%p682_p2)
}
   0x9   :  { %s686_s27 = scalar_lea.vmem %s29_s19, 4096  ;;  %p691_p4 = scmp.lt.s32.totalorder %s29_s19, %s29_s19 }
   0xa   :  { %p687_p3 = scmp.ne.s32.totalorder %s29_s19, %s686_s27  ;;  %p692_p5 = scmp.lt.s32.totalorder %s686_s27, %s686_s27 }
   0xc   :  { %p693_p6 = por %p692_p5, %p691_p4 }
   0xe   :  { %p694_p7 = pnand %p693_p6, %p687_p3 }
  0x10   :  { %697 = shalt.err (!%p694_p7)
}
  0x11   :  { %s771_s28 = smov 128   ;;  %s772_s29 = smov 8  }
  0x12   :  { %34 = dma.hbm_to_vmem [thread:$0]  %s863_s1, 4096, %s29_s19, [#allocation7], %s771_s28, %s771_s28, %s772_s29  }
  0x13   :  { %s773_s7 = smov [#allocation3]   ;;  %s774_s9 = smov [#allocation8]  }
  0x14   :  { %s19_s8 = sshll.u32 %s773_s7, 4  ;;  %s42_s10 = sshll.u32 %s774_s9, 4  ;;  %s20_s8 = int_to_ptr.vmem [resolvable:$true] %s19_s8  ;;  %s43_s10 = int_to_ptr.vmem [resolvable:$true] %s42_s10 }
  0x15   :  { %s698_s13 = scalar_lea.hbm %s862_s0, 256 }
  0x16   :  { %p699_p8 = scmp.ne.s32.totalorder %s862_s0, %s698_s13  ;;  %p702_p9 = scmp.lt.u32.totalorder %s698_s13, %s862_s0 }
  0x18   :  { %p704_p10 = pnand %p702_p9, %p699_p8 }
  0x1a   :  { %707 = shalt.err (!%p704_p10)
}
  0x1b   :  { %s708_s1 = scalar_lea.vmem %s20_s8, 256  ;;  %p713_p12 = scmp.lt.s32.totalorder %s20_s8, %s20_s8 }
  0x1c   :  { %p709_p11 = scmp.ne.s32.totalorder %s20_s8, %s708_s1  ;;  %p714_p13 = scmp.lt.s32.totalorder %s708_s1, %s708_s1 }
  0x1e   :  { %p715_p0 = por %p714_p13, %p713_p12 }
  0x20   :  { %p716_p1 = pnand %p715_p0, %p709_p11 }
  0x22   :  { %719 = shalt.err (!%p716_p1)
}
  0x23   :  { %22 = dma.hbm_to_vmem [thread:$0]  %s862_s0, 256, %s20_s8, [#allocation4]  }
  0x24   :  { %s720_s22 = scalar_lea.hbm %s865_s3, 2048 }
  0x25   :  { %p721_p2 = scmp.ne.s32.totalorder %s865_s3, %s720_s22  ;;  %p724_p3 = scmp.lt.u32.totalorder %s720_s22, %s865_s3 }
  0x27   :  { %p726_p4 = pnand %p724_p3, %p721_p2 }
  0x29   :  { %729 = shalt.err (!%p726_p4)
}
  0x2a   :  { %s730_s27 = scalar_lea.vmem %s43_s10, 2048  ;;  %p735_p6 = scmp.lt.s32.totalorder %s43_s10, %s43_s10 }
  0x2b   :  { %p731_p5 = scmp.ne.s32.totalorder %s43_s10, %s730_s27  ;;  %p736_p7 = scmp.lt.s32.totalorder %s730_s27, %s730_s27 }
  0x2d   :  { %p737_p8 = por %p736_p7, %p735_p6 }
  0x2f   :  { %p738_p9 = pnand %p737_p8, %p731_p5 }
  0x31   :  { %741 = shalt.err (!%p738_p9)
}
  0x32   :  { %s775_s0 = smov 64   ;;  %s776_s28 = smov 4  }
  0x33   :  { %48 = dma.hbm_to_vmem [thread:$0]  %s865_s3, 2048, %s43_s10, [#allocation7], %s775_s0, %s775_s0, %s776_s28  }
  0x34   :  { %764 = dma.done.wait [#allocation4], 256  }
  0x35   :  { %765 = vsyncadd [#allocation4], 4294967040 }
  0x36   :  { %766 = dma.done.wait [#allocation7], 6144  }
  0x37   :  { %767 = vsyncadd [#allocation7], 4294961152  ;;  %v610_v0 = vld [vmem:[#allocation6 + $0x4] ss:$8 sps:$4 sm:$0xff]   ;;  %v612_v1 = vld [vmem:[#allocation6] ss:$8 sps:$4 sm:$0xff]   ;;  %v317_v52 = vlaneseq }
  0x38   :  { %265 = vmatprep.subr.bf16.mxu0 %v610_v0  ;;  %v613_v2 = vld [vmem:[#allocation6 + $0x14] ss:$8 sps:$4 sm:$0xff]   ;;  %v615_v3 = vld [vmem:[#allocation6 + $0x10] ss:$8 sps:$4 sm:$0xff]   ;;  %v616_v4 = vld [vmem:[#allocation6 + $0x24] ss:$8 sps:$4 sm:$0xff]  }
  0x39   :  { %266 = vmatpush1.bf16.msra.mxu0 %v612_v1  ;;  %v618_v5 = vld [vmem:[#allocation6 + $0x20] ss:$8 sps:$4 sm:$0xff]   ;;  %v619_v6 = vld [vmem:[#allocation6 + $0x34] ss:$8 sps:$4 sm:$0xff]   ;;  %v621_v7 = vld [vmem:[#allocation6 + $0x30] ss:$8 sps:$4 sm:$0xff]  }
  0x3a   :  { %267 = vmatprep.subr.bf16.mxu0 %v613_v2  ;;  %v622_v8 = vld [vmem:[#allocation6 + $0x44] ss:$8 sps:$4 sm:$0xff]   ;;  %v624_v9 = vld [vmem:[#allocation6 + $0x40] ss:$8 sps:$4 sm:$0xff]   ;;  %v625_v10 = vld [vmem:[#allocation6 + $0x54] ss:$8 sps:$4 sm:$0xff]  }
  0x3b   :  { %v627_v11 = vld [vmem:[#allocation6 + $0x50] ss:$8 sps:$4 sm:$0xff]   ;;  %v628_v12 = vld [vmem:[#allocation6 + $0x64] ss:$8 sps:$4 sm:$0xff]   ;;  %v630_v13 = vld [vmem:[#allocation6 + $0x60] ss:$8 sps:$4 sm:$0xff]  }
  0x3c   :  { %v70_v14 = vld [vmem:[#allocation3 + $0x8] sm:$0xff]  ;;  %v658_v17 = vld [vmem:[#allocation8 + $0x40] sm:$0xff]   ;;  %v660_v19 = vld [vmem:[#allocation8 + $0x48] sm:$0xff]   ;;  %v318_v53 = vshrl.u32 %v317_v52, 7 }
  0x3d   :  { %268 = vmatpush1.bf16.msra.mxu0 %v615_v3  ;;  %v631_v15 = vld [vmem:[#allocation6 + $0x74] ss:$8 sps:$4 sm:$0xff]   ;;  %v72_v16 = vpack.c.bf16 %v70_v14, %v70_v14  ;;  %v659_v18 = vld [vmem:[#allocation8] sm:$0xff]   ;;  %v633_v20 = vld [vmem:[#allocation6 + $0x70] ss:$8 sps:$4 sm:$0xff]   ;;  %580 = vmatprep.subr.bf16.mxu1 %v658_v17 }
  0x3e   :  { %269 = vmatprep.subr.bf16.mxu0 %v616_v4  ;;  %581 = vmatpush3.bf16.msra.mxu1 %v659_v18  ;;  %v661_v21 = vld [vmem:[#allocation8 + $0x8] sm:$0xff]   ;;  %v662_v22 = vld [vmem:[#allocation8 + $0x50] sm:$0xff]   ;;  %v664_v27 = vld [vmem:[#allocation8 + $0x58] sm:$0xff]   ;;  %v319_v54 = vsub.s32 0, %v318_v53  ;;  %v323_v56 = vsub.s32 1, %v318_v53 }
  0x3f   :  { %297 = vmatprep.mubr.bf16.mxu0 %v72_v16  ;;  %582 = vmatprep.subr.bf16.mxu1 %v660_v19  ;;  %v634_v23 = vld [vmem:[#allocation6 + $0x84] ss:$8 sps:$4 sm:$0xff]   ;;  %v636_v24 = vld [vmem:[#allocation6 + $0x80] ss:$8 sps:$4 sm:$0xff]   ;;  %v637_v25 = vld [vmem:[#allocation6 + $0x94] ss:$8 sps:$4 sm:$0xff]  }
  0x40   :  { %v663_v26 = vld [vmem:[#allocation8 + $0x10] sm:$0xff]   ;;  %v665_v28 = vld [vmem:[#allocation8 + $0x18] sm:$0xff]   ;;  %v666_v30 = vld [vmem:[#allocation8 + $0x60] sm:$0xff]  }
  0x41   :  { %270 = vmatpush1.bf16.msra.mxu0 %v618_v5  ;;  %v639_v29 = vld [vmem:[#allocation6 + $0x90] ss:$8 sps:$4 sm:$0xff]   ;;  %v640_v31 = vld [vmem:[#allocation6 + $0xa4] ss:$8 sps:$4 sm:$0xff]   ;;  %v642_v33 = vld [vmem:[#allocation6 + $0xa0] ss:$8 sps:$4 sm:$0xff]  }
  0x42   :  { %271 = vmatprep.subr.bf16.mxu0 %v619_v6  ;;  %583 = vmatpush3.bf16.msra.mxu1 %v661_v21  ;;  %v667_v32 = vld [vmem:[#allocation8 + $0x20] sm:$0xff]   ;;  %v668_v34 = vld [vmem:[#allocation8 + $0x68] sm:$0xff]   ;;  %v643_v35 = vld [vmem:[#allocation6 + $0xb4] ss:$8 sps:$4 sm:$0xff]  }
  0x43   :  { %584 = vmatprep.subr.bf16.mxu1 %v662_v22  ;;  %v669_v36 = vld [vmem:[#allocation8 + $0x28] sm:$0xff]   ;;  %v645_v37 = vld [vmem:[#allocation6 + $0xb0] ss:$8 sps:$4 sm:$0xff]   ;;  %v649_v40 = vld [vmem:[#allocation6 + $0xd4] ss:$8 sps:$4 sm:$0xff]  }
  0x44   :  { %v646_v38 = vld [vmem:[#allocation6 + $0xc4] ss:$8 sps:$4 sm:$0xff]   ;;  %v648_v39 = vld [vmem:[#allocation6 + $0xc0] ss:$8 sps:$4 sm:$0xff]   ;;  %v651_v41 = vld [vmem:[#allocation6 + $0xd0] ss:$8 sps:$4 sm:$0xff]  }
  0x45   :  { %272 = vmatpush1.bf16.msra.mxu0 %v621_v7  ;;  %v652_v42 = vld [vmem:[#allocation6 + $0xe4] ss:$8 sps:$4 sm:$0xff]   ;;  %v654_v43 = vld [vmem:[#allocation6 + $0xe0] ss:$8 sps:$4 sm:$0xff]   ;;  %v655_v44 = vld [vmem:[#allocation6 + $0xf4] ss:$8 sps:$4 sm:$0xff]  }
  0x46   :  { %273 = vmatprep.subr.bf16.mxu0 %v622_v8  ;;  %585 = vmatpush3.bf16.msra.mxu1 %v663_v26  ;;  %v657_v45 = vld [vmem:[#allocation6 + $0xf0] ss:$8 sps:$4 sm:$0xff]  }
  0x47   :  { %586 = vmatprep.subr.bf16.mxu1 %v664_v27  ;;  %v69_v46 = vld [vmem:[#allocation3] sm:$0xff]  ;;  %v672_v50 = vld [vmem:[#allocation8 + $0x78] sm:$0xff]  }
  0x48   :  { %v71_v47 = vpack.c.bf16 %v69_v46, %v69_v46  ;;  %v670_v48 = vld [vmem:[#allocation8 + $0x70] sm:$0xff]   ;;  %v673_v51 = vld [vmem:[#allocation8 + $0x38] sm:$0xff]  }
  0x49   :  { %274 = vmatpush1.bf16.msra.mxu0 %v624_v9  ;;  %v671_v49 = vld [vmem:[#allocation8 + $0x30] sm:$0xff]  }
  0x4a   :  { %275 = vmatprep.subr.bf16.mxu0 %v625_v10  ;;  %587 = vmatpush3.bf16.msra.mxu1 %v665_v28  ;;  %v315_v55 = vld [vmem:[%s864_s2] sm:$0x3]  ;;  %s777_s2 = smov [#allocation9]  }
  0x4b   :  { %588 = vmatprep.subr.bf16.mxu1 %v666_v30  ;;  %v320_v57 = vrot.slane %v315_v55, %v319_v54  ;;  %v324_v58 = vrot.slane %v315_v55, %v323_v56  ;;  %v563_v7 = vld [vmem:[%s866_s4] ss:$0 sm:$0xff]  ;;  %s521_s9 = sshll.u32 %s777_s2, 4  ;;  %s522_s9 = int_to_ptr.vmem [resolvable:$true] %s521_s9 }
  0x4c   :  { %s742_s10 = scalar_lea.vmem %s522_s9, 128  ;;  %p747_p11 = scmp.lt.s32.totalorder %s522_s9, %s522_s9 }
  0x4d   :  { %276 = vmatpush1.bf16.msra.mxu0 %v627_v11  ;;  %p743_p10 = scmp.ne.s32.totalorder %s522_s9, %s742_s10  ;;  %p748_p12 = scmp.lt.s32.totalorder %s742_s10, %s742_s10 }
  0x4e   :  { %277 = vmatprep.subr.bf16.mxu0 %v628_v12  ;;  %589 = vmatpush3.bf16.msra.mxu1 %v667_v32 }
  0x4f   :  { %590 = vmatprep.subr.bf16.mxu1 %v668_v34  ;;  %p749_p13 = por %p748_p12, %p747_p11 }
  0x51   :  { %278 = vmatpush1.bf16.msra.mxu0 %v630_v13  ;;  %p750_p0 = pnand %p749_p13, %p743_p10 }
  0x52   :  { %279 = vmatprep.subr.bf16.mxu0 %v631_v15  ;;  %591 = vmatpush3.bf16.msra.mxu1 %v669_v36 }
  0x53   :  { %592 = vmatprep.subr.bf16.mxu1 %v670_v48 }
  0x55   :  { %280 = vmatpush1.bf16.msra.mxu0 %v633_v20 }
  0x56   :  { %281 = vmatprep.subr.bf16.mxu0 %v634_v23  ;;  %593 = vmatpush3.bf16.msra.mxu1 %v671_v49 }
  0x57   :  { %594 = vmatprep.subr.bf16.mxu1 %v672_v50 }
  0x59   :  { %282 = vmatpush1.bf16.msra.mxu0 %v636_v24 }
  0x5a   :  { %283 = vmatprep.subr.bf16.mxu0 %v637_v25  ;;  %595 = vmatpush3.bf16.msra.mxu1 %v673_v51 }
  0x5d   :  { %284 = vmatpush1.bf16.msra.mxu0 %v639_v29 }
  0x5e   :  { %285 = vmatprep.subr.bf16.mxu0 %v640_v31 }
  0x61   :  { %286 = vmatpush1.bf16.msra.mxu0 %v642_v33 }
  0x62   :  { %287 = vmatprep.subr.bf16.mxu0 %v643_v35 }
  0x65   :  { %288 = vmatpush1.bf16.msra.mxu0 %v645_v37 }
  0x66   :  { %289 = vmatprep.subr.bf16.mxu0 %v646_v38 }
  0x69   :  { %290 = vmatpush1.bf16.msra.mxu0 %v648_v39 }
  0x6a   :  { %291 = vmatprep.subr.bf16.mxu0 %v649_v40 }
  0x6d   :  { %292 = vmatpush1.bf16.msra.mxu0 %v651_v41 }
  0x6e   :  { %293 = vmatprep.subr.bf16.mxu0 %v652_v42 }
  0x71   :  { %294 = vmatpush1.bf16.msra.mxu0 %v654_v43 }
  0x72   :  { %295 = vmatprep.subr.bf16.mxu0 %v655_v44 }
  0x75   :  { %296 = vmatpush1.bf16.msra.mxu0 %v657_v45 }
  0x78   :  { %298 = vmatmul.mubr.bf16.vlgmr.msra.gmra.mrb[0].mxu0 %v71_v47 }
 0x14b   :  { %v299_v59 = vpop.f32.mrb[0].mxu0 }
 0x14c   :  { %v327_v60 = vadd.f32 %v320_v57, %v299_v59  ;;  %v301_v61 = vpop.f32.mrb[1].mxu0 }
 0x14d   :  { %v328_v62 = vadd.f32 %v324_v58, %v301_v61  ;;  %v303_v63 = vpop.f32.mrb[2].mxu0 }
 0x14e   :  { %v329_v0 = vmax.f32 %v327_v60, 0.0  ;;  %v304_v1 = vpop.f32.mrb[3].mxu0 }
 0x14f   :  { %v330_v2 = vmax.f32 %v328_v62, 0.0 }
 0x150   :  { %v331_v4 = vpack.c.bf16 %v329_v0, %v329_v0 }
 0x151   :  { %v332_v3 = vpack.c.bf16 %v330_v2, %v330_v2 }
 0x153   :  { %500 = vmatprep.mubr.bf16.mxu1 %v332_v3 }
 0x154   :  { %501 = vmatmul.mubr.bf16.vlgmr.msra.gmra.mrb[0].mxu1 %v331_v4 }
 0x227   :  { %v596_v5 = vpop.f32.mrb[0].mxu1 }
 0x228   :  { %v597_v6 = vpop.f32.mrb[1].mxu1 }
 0x229   :  { %v598_v8 = vadd.f32 %v597_v6, %v596_v5  ;;  %v599_v9 = vpop.f32.mrb[2].mxu1 }
 0x22a   :  { %v600_v10 = vpop.f32.mrb[3].mxu1 }
 0x22b   :  { %v503_v11 = vadd.f32 %v598_v8, %v563_v7 }
 0x22d   :  { %v508_v12 = vmul.f32 %v503_v11, %v503_v11 }
 0x22f   :  { %509 = vadd.xlane.f32.xlu0 %v508_v12 }
 0x2bc   :  { %v510_v13 = vpop.xlane.xlu0 %509 }
 0x2bd   :  { %v511_v14 = vmax.f32 %v510_v13, 1e-24 }
 0x2bf   :  { %674 = vrsqrt.f32 %v511_v14 }
 0x2c9   :  { %v675_v15 = vpop.eup %674 }
 0x2ca   :  { %v513_v16 = vmul.f32 %v675_v15, %v503_v11 }
 0x2cc   :  { %514 = vst [vmem:[#allocation9] sm:$0xff] %v513_v16 }
 0x2cd   :  { %753 = shalt.err (!%p750_p0)
}
 0x2ce   :  { %s754_s12 = scalar_lea.hbm %s867_s5, 128 }
 0x2cf   :  { %p755_p1 = scmp.ne.s32.totalorder %s867_s5, %s754_s12  ;;  %p758_p2 = scmp.lt.u32.totalorder %s754_s12, %s867_s5 }
 0x2d1   :  { %p760_p3 = pnand %p758_p2, %p755_p1 }
 0x2d3   :  { %763 = shalt.err (!%p760_p3)
}
 0x2d4   :  { %524 = dma.vmem_to_hbm [thread:$0]  %s522_s9, 128, %s867_s5, [#allocation5]  }
 0x2d5   :  { %768 = dma.done.wait [#allocation5], 128  }
 0x2d6   :  { %769 = vsyncadd [#allocation5], 4294967168 }
 0x2d7   :  { %528 = vsyncpa [#allocation4], 1 }
 0x2d8   :  { %529 = vsyncpa [#allocation7], 1 }
 0x2d9   :  { %530 = vsyncpa [#allocation5], 1 }

</bundles_post_ra>
